<compile_context>
chip_gen: v5e
topology: v5e:2x2
jax: 0.10.0
libtpu: 0.0.40
codegen_flags: <defaults>
</compile_context>

<pallas_src>
import math

import jax
import jax.numpy as jnp
from jax.experimental import pallas as pl
from jax.experimental.pallas import tpu as pltpu


def _patch_embed_kernel(x_ref, w1_ref, b1_ref, w2_ref, b2_ref, pe_ref, o_ref):
    # x_ref:  (tb, tn, P)   patch rows for this (BC-tile, N-tile)
    # w1_ref: (P, H), b1_ref: (1, H)
    # w2_ref: (H, D), b2_ref: (1, D)
    # pe_ref: (tn, D)       precomputed sinusoidal PE rows for this N-tile
    # o_ref:  (tb, tn, D)
    x = x_ref[...]                                                  # (tb, tn, P)

    # value_embedding: Linear -> ReLU -> (Dropout: identity) -> Linear -> ReLU
    h = jnp.einsum("bnp,ph->bnh", x, w1_ref[...],
                   preferred_element_type=jnp.float32) + b1_ref[...]
    h = jnp.maximum(h, 0.0)
    y = jnp.einsum("bnh,hd->bnd", h, w2_ref[...],
                   preferred_element_type=jnp.float32) + b2_ref[...]
    y = jnp.maximum(y, 0.0)                                         # (tb, tn, D)

    # + positional embedding (precomputed, resident across the inner BC loop)
    o_ref[...] = (y + pe_ref[...][None, :, :]).astype(o_ref.dtype)


def patch_embedding_layered(x, w1, b1, w2, b2, *, patch_len, stride, d_model,
                            max_len=5000, rows_per_step=1024):
    """Equivalent of PatchEmbedding_Layered(d_model, patch_len, stride).forward(x)
    in eval mode. Returns (B*C, num_patches, d_model) float32."""
    B, L, C = x.shape
    H = w1.shape[1]
    D = d_model
    assert D % 2 == 0, "even d_model required (matches PyTorch reference)"
    assert w1.shape == (patch_len, H) and w2.shape == (H, D)
    b1 = jnp.asarray(b1, jnp.float32).reshape(1, H)
    b2 = jnp.asarray(b2, jnp.float32).reshape(1, D)

    # --- replicate-pad + unfold (layout plumbing, done in the wrapper) -------
    if L % stride != 0:
        length = (L // stride + 1) * stride
        x = jnp.pad(x, ((0, 0), (0, length - L), (0, 0)), mode="edge")
    x_perm = jnp.transpose(x, (0, 2, 1))                            # (B, C, L_pad)
    L_pad = x_perm.shape[-1]
    assert L_pad >= patch_len
    N = (L_pad - patch_len) // stride + 1
    assert 0 < N <= max_len

    if patch_len == stride:
        patches = x_perm.reshape(B, C, N, patch_len)                # free reshape
    else:
        # TODO(synk): for stride < patch_len this wrapper gather materializes a
        # (patch_len/stride)x-duplicated patch tensor in HBM; an in-kernel
        # unfold from the contiguous padded sequence would avoid that pass.
        idx = jnp.arange(N)[:, None] * stride + jnp.arange(patch_len)[None, :]
        patches = x_perm[:, :, idx]                                 # (B, C, N, P)
    patches = patches.reshape(B * C, N, patch_len).astype(jnp.float32)
    BC, _, P = patches.shape

    # --- precomputed sinusoidal PE table (bit-exact vs. the PyTorch buffer) --
    position = jnp.arange(N, dtype=jnp.float32)[:, None]
    div_term = jnp.exp(
        jnp.arange(0, D, 2, dtype=jnp.float32) * (-math.log(10000.0) / D))
    pe = jnp.zeros((N, D), jnp.float32)
    pe = pe.at[:, 0::2].set(jnp.sin(position * div_term))
    pe = pe.at[:, 1::2].set(jnp.cos(position * div_term))            # (N, D)

    # --- tile / grid selection ----------------------------------------------
    # Fuse rows across (BC, N): target ~rows_per_step rows per grid step,
    # bounded by a conservative VMEM budget (double-buffered x + out tiles;
    # the small P dim lane-pads to 128 inside VMEM).
    p_pad = ((P + 127) // 128) * 128
    row_bytes = 4 * (p_pad + D)                      # x row + out row, per buffer
    vmem_budget = 8 * 1024 * 1024                    # tile buffers only; safe on v7x
    rows_cap = min(int(rows_per_step), vmem_budget // (2 * row_bytes))
    rows_cap = max(8, (rows_cap // 8) * 8)

    if N <= rows_cap:
        tn = N                                       # full N per block
        tb = min(BC, max(1, rows_cap // N))          # fuse BC rows into the tile
    else:
        tn = rows_cap                                # multiple of 8
        tb = 1

    # N-tile axis first, BC axis last (fastest): PE block index is constant
    # across the inner BC loop -> stays resident, DMA'd only ntiles_N times.
    grid = (pl.cdiv(N, tn), pl.cdiv(BC, tb))

    out = pl.pallas_call(
        _patch_embed_kernel,
        out_shape=jax.ShapeDtypeStruct((BC, N, D), jnp.float32),
        grid_spec=pltpu.PrefetchScalarGridSpec(
            num_scalar_prefetch=0,
            grid=grid,
            in_specs=[
                pl.BlockSpec((tb, tn, P), lambda j, b: (b, j, 0)),   # patches
                pl.BlockSpec((P, H), lambda j, b: (0, 0)),           # w1 (resident)
                pl.BlockSpec((1, H), lambda j, b: (0, 0)),           # b1
                pl.BlockSpec((H, D), lambda j, b: (0, 0)),           # w2 (resident)
                pl.BlockSpec((1, D), lambda j, b: (0, 0)),           # b2
                pl.BlockSpec((tn, D), lambda j, b: (j, 0)),          # PE rows
            ],
            out_specs=pl.BlockSpec((tb, tn, D), lambda j, b: (b, j, 0)),
        ),
        compiler_params=pltpu.CompilerParams(
            dimension_semantics=("parallel", "parallel"),
            vmem_limit_bytes=32 * 1024 * 1024,
        ),
    )(patches, w1, b1, w2, b2, pe)
    return out


def _reference(x, w1, b1, w2, b2, patch_len, stride, d_model):
    """Pure-JAX mirror of the PyTorch forward (eval mode)."""
    B, L, C = x.shape
    if L % stride != 0:
        length = (L // stride + 1) * stride
        x = jnp.pad(x, ((0, 0), (0, length - L), (0, 0)), mode="edge")
    xp = jnp.transpose(x, (0, 2, 1))
    L_pad = xp.shape[-1]
    N = (L_pad - patch_len) // stride + 1
    idx = jnp.arange(N)[:, None] * stride + jnp.arange(patch_len)[None, :]
    patches = xp[:, :, idx].reshape(B * C, N, patch_len)

    h = jnp.maximum(patches @ w1 + b1.reshape(1, -1), 0.0)
    y = jnp.maximum(h @ w2 + b2.reshape(1, -1), 0.0)

    position = jnp.arange(N, dtype=jnp.float32)[:, None]
    div_term = jnp.exp(
        jnp.arange(0, d_model, 2, dtype=jnp.float32) * (-math.log(10000.0) / d_model))
    pe = jnp.zeros((N, d_model), jnp.float32)
    pe = pe.at[:, 0::2].set(jnp.sin(position * div_term))
    pe = pe.at[:, 1::2].set(jnp.cos(position * div_term))
    return y + pe[None]


def _run_case(key, B, L, C, patch_len, stride, d_model, rows_per_step):
    H = d_model // 2
    k1, k2, k3, k4, k5 = jax.random.split(key, 5)
    x = jax.random.normal(k1, (B, L, C), dtype=jnp.float32)
    w1 = jax.random.normal(k2, (patch_len, H), dtype=jnp.float32) * 0.3
    b1 = jax.random.normal(k3, (1, H), dtype=jnp.float32) * 0.1
    w2 = jax.random.normal(k4, (H, d_model), dtype=jnp.float32) * 0.3
    b2 = jax.random.normal(k5, (1, d_model), dtype=jnp.float32) * 0.1

    out = patch_embedding_layered(
        x, w1, b1, w2, b2, patch_len=patch_len, stride=stride,
        d_model=d_model, rows_per_step=rows_per_step)
    out = jax.block_until_ready(out)

    ref = _reference(x, w1, b1, w2, b2, patch_len, stride, d_model)
    assert out.shape == ref.shape, (out.shape, ref.shape)
    assert out.dtype == jnp.float32
    max_err = float(jnp.max(jnp.abs(out - ref)))
    assert jnp.allclose(out, ref, atol=1e-4, rtol=1e-4), max_err
    return out.shape, max_err


if __name__ == "__main__":
    key = jax.random.PRNGKey(0)
    k_a, k_b = jax.random.split(key)

    # Case 1: L % stride != 0 (replicate pad), stride < patch_len (gather path),
    #         whole problem fits in one fused (tb, N) tile.
    _run_case(k_a, B=2, L=18, C=3, patch_len=8, stride=4, d_model=32,
              rows_per_step=1024)

    # Case 2: stride == patch_len (reshape fast-path), multi-step grid along
    #         both axes with a ragged last N-tile (rows_per_step forced small).
    _run_case(k_b, B=2, L=170, C=2, patch_len=8, stride=8, d_model=64,
              rows_per_step=8)

    print("KERNEL_OK")
</pallas_src>

<mosaic_0001>
module attributes {stable_mosaic.version = 11 : i64} {
  func.func @_patch_embed_kernel(%arg0: i32, %arg1: i32, %arg2: memref<6x4x8xf32, #tpu.memory_space<vmem>>, %arg3: memref<8x16xf32, #tpu.memory_space<vmem>>, %arg4: memref<1x16xf32, #tpu.memory_space<vmem>>, %arg5: memref<16x32xf32, #tpu.memory_space<vmem>>, %arg6: memref<1x32xf32, #tpu.memory_space<vmem>>, %arg7: memref<4x32xf32, #tpu.memory_space<vmem>>, %arg8: memref<6x4x32xf32, #tpu.memory_space<vmem>>) attributes {dimension_semantics = [#tpu.dimension_semantics<parallel>, #tpu.dimension_semantics<parallel>], iteration_bounds = array<i64: 1, 1>, scalar_prefetch = 0 : i64, scratch_operands = 0 : i64, tpu.core_type = #tpu.core_type<tc>, window_params = [{transform_indices = @transform_0, window_bounds = array<i64: 6, 4, 8>}, {pipeline_mode = #tpu.pipeline_mode<synchronous>, transform_indices = @transform_1, window_bounds = array<i64: 8, 16>}, {pipeline_mode = #tpu.pipeline_mode<synchronous>, transform_indices = @transform_2, window_bounds = array<i64: 1, 16>}, {pipeline_mode = #tpu.pipeline_mode<synchronous>, transform_indices = @transform_3, window_bounds = array<i64: 16, 32>}, {pipeline_mode = #tpu.pipeline_mode<synchronous>, transform_indices = @transform_4, window_bounds = array<i64: 1, 32>}, {transform_indices = @transform_5, window_bounds = array<i64: 4, 32>}, {transform_indices = @transform_6, window_bounds = array<i64: 6, 4, 32>}]} {
    %c0 = arith.constant 0 : index
    %c0_0 = arith.constant 0 : index
    %c0_1 = arith.constant 0 : index
    %0 = vector.load %arg2[%c0, %c0_0, %c0_1] : memref<6x4x8xf32, #tpu.memory_space<vmem>>, vector<6x4x8xf32>
    %c0_2 = arith.constant 0 : index
    %c0_3 = arith.constant 0 : index
    %1 = vector.load %arg3[%c0_2, %c0_3] : memref<8x16xf32, #tpu.memory_space<vmem>>, vector<8x16xf32>
    "tpu.trace_start"() <{level = 10 : i32, message = "bnp,ph->bnh"}> : () -> ()
    %cst = arith.constant dense<0.000000e+00> : vector<6x4x16xf32>
    %2 = tpu.matmul %0, %1, %cst {dimension_numbers = #tpu.dot_dimension_numbers<[2], [0], [0, 1], [1], [0, 0, 0, 1, 1, 1], [], []>} : vector<6x4x8xf32>, vector<8x16xf32>, vector<6x4x16xf32> -> vector<6x4x16xf32>
    "tpu.trace_stop"() : () -> ()
    %c0_4 = arith.constant 0 : index
    %c0_5 = arith.constant 0 : index
    %3 = vector.load %arg4[%c0_4, %c0_5] : memref<1x16xf32, #tpu.memory_space<vmem>>, vector<1x16xf32>
    %4 = vector.shape_cast %3 : vector<1x16xf32> to vector<1x1x16xf32>
    %5 = vector.broadcast %4 : vector<1x1x16xf32> to vector<6x4x16xf32>
    %6 = arith.addf %2, %5 : vector<6x4x16xf32>
    %cst_6 = arith.constant 0.000000e+00 : f32
    %7 = vector.broadcast %cst_6 : f32 to vector<6x4x16xf32>
    %8 = arith.maximumf %6, %7 : vector<6x4x16xf32>
    %c0_7 = arith.constant 0 : index
    %c0_8 = arith.constant 0 : index
    %9 = vector.load %arg5[%c0_7, %c0_8] : memref<16x32xf32, #tpu.memory_space<vmem>>, vector<16x32xf32>
    "tpu.trace_start"() <{level = 10 : i32, message = "bnh,hd->bnd"}> : () -> ()
    %cst_9 = arith.constant dense<0.000000e+00> : vector<6x4x32xf32>
    %10 = tpu.matmul %8, %9, %cst_9 {dimension_numbers = #tpu.dot_dimension_numbers<[2], [0], [0, 1], [1], [0, 0, 0, 1, 1, 1], [], []>} : vector<6x4x16xf32>, vector<16x32xf32>, vector<6x4x32xf32> -> vector<6x4x32xf32>
    "tpu.trace_stop"() : () -> ()
    %c0_10 = arith.constant 0 : index
    %c0_11 = arith.constant 0 : index
    %11 = vector.load %arg6[%c0_10, %c0_11] : memref<1x32xf32, #tpu.memory_space<vmem>>, vector<1x32xf32>
    %12 = vector.shape_cast %11 : vector<1x32xf32> to vector<1x1x32xf32>
    %13 = vector.broadcast %12 : vector<1x1x32xf32> to vector<6x4x32xf32>
    %14 = arith.addf %10, %13 : vector<6x4x32xf32>
    %cst_12 = arith.constant 0.000000e+00 : f32
    %15 = vector.broadcast %cst_12 : f32 to vector<6x4x32xf32>
    %16 = arith.maximumf %14, %15 : vector<6x4x32xf32>
    %c0_13 = arith.constant 0 : index
    %c0_14 = arith.constant 0 : index
    %17 = vector.load %arg7[%c0_13, %c0_14] : memref<4x32xf32, #tpu.memory_space<vmem>>, vector<4x32xf32>
    %18 = vector.shape_cast %17 : vector<4x32xf32> to vector<1x4x32xf32>
    %19 = vector.broadcast %18 : vector<1x4x32xf32> to vector<6x4x32xf32>
    %20 = arith.addf %16, %19 : vector<6x4x32xf32>
    %c0_15 = arith.constant 0 : index
    %c0_16 = arith.constant 0 : index
    %c0_17 = arith.constant 0 : index
    %21 = vector.load %arg8[%c0_15, %c0_16, %c0_17] : memref<6x4x32xf32, #tpu.memory_space<vmem>>, vector<6x4x32xf32>
    tpu.vector_store %arg8[%c0_15, %c0_16, %c0_17], %20 {strides = array<i32>} : memref<6x4x32xf32, #tpu.memory_space<vmem>>, vector<6x4x32xf32>,
    return
  }
  func.func @transform_0(%arg0: i32, %arg1: i32) -> (i32, i32, i32) {
    %c0_i32 = arith.constant 0 : i32
    %c0_i32_0 = arith.constant 0 : i32
    return %arg1, %arg0, %c0_i32 : i32, i32, i32
  }
  func.func @transform_1(%arg0: i32, %arg1: i32) -> (i32, i32) {
    %c0_i32 = arith.constant 0 : i32
    %c0_i32_0 = arith.constant 0 : i32
    %c0_i32_1 = arith.constant 0 : i32
    return %c0_i32, %c0_i32_0 : i32, i32
  }
  func.func @transform_2(%arg0: i32, %arg1: i32) -> (i32, i32) {
    %c0_i32 = arith.constant 0 : i32
    %c0_i32_0 = arith.constant 0 : i32
    %c0_i32_1 = arith.constant 0 : i32
    return %c0_i32, %c0_i32_0 : i32, i32
  }
  func.func @transform_3(%arg0: i32, %arg1: i32) -> (i32, i32) {
    %c0_i32 = arith.constant 0 : i32
    %c0_i32_0 = arith.constant 0 : i32
    %c0_i32_1 = arith.constant 0 : i32
    return %c0_i32, %c0_i32_0 : i32, i32
  }
  func.func @transform_4(%arg0: i32, %arg1: i32) -> (i32, i32) {
    %c0_i32 = arith.constant 0 : i32
    %c0_i32_0 = arith.constant 0 : i32
    %c0_i32_1 = arith.constant 0 : i32
    return %c0_i32, %c0_i32_0 : i32, i32
  }
  func.func @transform_5(%arg0: i32, %arg1: i32) -> (i32, i32) {
    %c0_i32 = arith.constant 0 : i32
    %c0_i32_0 = arith.constant 0 : i32
    return %arg0, %c0_i32 : i32, i32
  }
  func.func @transform_6(%arg0: i32, %arg1: i32) -> (i32, i32, i32) {
    %c0_i32 = arith.constant 0 : i32
    %c0_i32_0 = arith.constant 0 : i32
    return %arg1, %arg0, %c0_i32 : i32, i32, i32
  }
}

</mosaic_0001>

<bundles_post_ra>
// kernel: tpu_custom_call.1
= control target key start
LH: loop header
LB: loop body
LE: loop exit
PB: predicated region body
PF: predicated region fallthrough
CT: control target
= control target key end

     0   :  { %11 = vsyncpa [#allocation3], 0  ;;  %s569_s0 = inlined_call_operand.hbm [shape: f32[6,4,8], index: 0, kind: input, shape index: {}]   ;;  %s570_s1 = inlined_call_operand.hbm [shape: f32[8,16], index: 1, kind: input, shape index: {}]   ;;  %s571_s2 = inlined_call_operand.hbm [shape: f32[1,16], index: 2, kind: input, shape index: {}]   ;;  %s572_s3 = inlined_call_operand.hbm [shape: f32[16,32], index: 3, kind: input, shape index: {}]   ;;  %s573_s4 = inlined_call_operand.hbm [shape: f32[1,32], index: 4, kind: input, shape index: {}]   ;;  %s574_s5 = inlined_call_operand.vmem [shape: f32[4,32], index: 5, kind: input, shape index: {}]   ;;  %s575_s6 = inlined_call_operand.hbm [shape: f32[6,4,32], index: 6, kind: output, shape index: {}]  }
   0x1   :  { %12 = vsyncpa [#allocation6], 0 }
   0x2   :  { %13 = vsyncpa [#allocation9], 0  ;;  %s33_s23 = sshll.u32 %s570_s1, 4  ;;  %s34_s23 = int_to_ptr.hbm [resolvable:$true] %s33_s23 }
   0x3   :  { %14 = vsyncpa [#allocation4], 0  ;;  %s491_s24 = smov [#allocation5]   ;;  %s54_s28 = sshll.u32 %s572_s3, 4  ;;  %s55_s28 = int_to_ptr.hbm [resolvable:$true] %s54_s28 }
   0x4   :  { %s35_s25 = sshll.u32 %s491_s24, 4  ;;  %s492_s29 = smov [#allocation8]   ;;  %s36_s25 = int_to_ptr.vmem [resolvable:$true] %s35_s25 }
   0x5   :  { %38 = dma.hbm_to_vmem [thread:$0]  %s34_s23, 128, %s36_s25, [#allocation6]  }
   0x6   :  { %s56_s30 = sshll.u32 %s492_s29, 4  ;;  %s493_s7 = smov 128   ;;  %s57_s30 = int_to_ptr.vmem [resolvable:$true] %s56_s30 }
   0x7   :  { %s494_s8 = smov 8   ;;  %s19_s1 = sshll.u32 %s569_s0, 4  ;;  %s20_s1 = int_to_ptr.hbm [resolvable:$true] %s19_s1 }
   0x8   :  { %62 = dma.hbm_to_vmem [thread:$0]  %s55_s28, 256, %s57_s30, [#allocation9], %s493_s7, %s493_s7, %s494_s8  }
   0x9   :  { %s495_s11 = smov [#allocation2]   ;;  %s44_s3 = sshll.u32 %s571_s2, 4  ;;  %s45_s3 = int_to_ptr.hbm [resolvable:$true] %s44_s3 }
   0xa   :  { %s21_s12 = sshll.u32 %s495_s11, 4  ;;  %s496_s15 = smov 64   ;;  %s22_s12 = int_to_ptr.vmem [resolvable:$true] %s21_s12 }
   0xb   :  { %s497_s16 = smov 4   ;;  %s498_s17 = smov [#allocation7]  }
   0xc   :  { %27 = dma.hbm_to_vmem [thread:$0]  %s20_s1, 384, %s22_s12, [#allocation3], %s496_s15, %s496_s15, %s497_s16  }
   0xd   :  { %s46_s18 = sshll.u32 %s498_s17, 4  ;;  %s68_s0 = sshll.u32 %s573_s4, 4  ;;  %s47_s18 = int_to_ptr.vmem [resolvable:$true] %s46_s18  ;;  %s69_s0 = int_to_ptr.hbm [resolvable:$true] %s68_s0 }
   0xe   :  { %49 = dma.hbm_to_vmem [thread:$0]  %s45_s3, 16, %s47_s18, [#allocation6]  }
   0xf   :  { %s499_s21 = smov [#allocation10]  }
  0x10   :  { %s70_s22 = sshll.u32 %s499_s21, 4  ;;  %s71_s22 = int_to_ptr.vmem [resolvable:$true] %s70_s22 }
  0x11   :  { %73 = dma.hbm_to_vmem [thread:$0]  %s69_s0, 16, %s71_s22, [#allocation9]  }
  0x12   :  { %483 = dma.done.wait [#allocation3], 384  }
  0x13   :  { %484 = vsyncadd [#allocation3], 4294966912 }
  0x14   :  { %485 = dma.done.wait [#allocation6], 144  }
  0x15   :  { %486 = vsyncadd [#allocation6], 4294967152 }
  0x16   :  { %487 = dma.done.wait [#allocation9], 272  }
  0x17   :  { %488 = vsyncadd [#allocation9], 4294967024  ;;  %v102_v0 = vld [vmem:[#allocation5] sm:$0xff]  ;;  %v98_v1 = vld [vmem:[#allocation2 + $0x8] sm:$0xf]  ;;  %vm143_vm0 = vcmask 64512  }
  0x18   :  { %v99_v2 = vld [vmem:[#allocation2 + $0xc] sm:$0xf]  ;;  %322 = vmatpush.msra.mxu3 %v102_v0  ;;  %116 = vst [vmem:[#allocation1 + $0x10] ss:$2 sm:$0xff] %v98_v1  ;;  %v100_v3 = vld [vmem:[#allocation2 + $0x10] sm:$0xf]  ;;  %165 = vmatpush.msra.mxu0 %v102_v0 }
  0x19   :  { %v101_v4 = vld [vmem:[#allocation2 + $0x14] sm:$0xf]  ;;  %118 = vst [vmem:[#allocation1 + $0x11] ss:$2 sm:$0xff] %v99_v2  ;;  %v96_v5 = vld [vmem:[#allocation2] sm:$0xf] }
  0x1a   :  { %120 = vst [vmem:[#allocation1 + $0x20] ss:$2 sm:$0xff] %v100_v3  ;;  %v97_v6 = vld [vmem:[#allocation2 + $0x4] sm:$0xf]  ;;  %v337_v7 = vld [vmem:[#allocation7] ss:$0 sm:$0xff] }
  0x1b   :  { %122 = vst [vmem:[#allocation1 + $0x21] ss:$2 sm:$0xff] %v101_v4  ;;  %v192_v11 = vld [vmem:[#allocation8 + $0x8] sm:$0xff]  ;;  %v191_v12 = vld [vmem:[#allocation8] sm:$0xff]  ;;  %v338_v30 = vld [vmem:[#allocation10] ss:$0 sm:$0xff] }
  0x1c   :  { %112 = vst [vmem:[#allocation1] ss:$2 sm:$0xff] %v96_v5  ;;  %323 = vmatpush.msra.mxu1 %v192_v11  ;;  %324 = vmatpush.msra.mxu2 %v192_v11  ;;  %vm233_vm1 = vcmask 130048   ;;  %v281_v41 = vld [vmem:[%s574_s5] sm:$0xf]  ;;  %vm288_vm2 = vcmask 257024  }
  0x1d   :  { %114 = vst [vmem:[#allocation1 + $0x1] ss:$2 sm:$0xff] %v97_v6  ;;  %254 = vmatpush.msrb.mxu0 %v192_v11  ;;  %s500_s5 = smov [#allocation11]   ;;  %s301_s26 = sshll.u32 %s575_s6, 4  ;;  %s302_s26 = int_to_ptr.hbm [resolvable:$true] %s301_s26 }
  0x1e   :  { %325 = vmatpush.msra.mxu1 %v191_v12  ;;  %326 = vmatpush.msra.mxu2 %v191_v12  ;;  %s299_s23 = sshll.u32 %s500_s5, 4  ;;  %s300_s23 = int_to_ptr.vmem [resolvable:$true] %s299_s23 }
  0x1f   :  { %255 = vmatpush.msrb.mxu0 %v191_v12 }
  0x20   :  { %v124_v8 = vld.sshfl [vmem:[#allocation1 + $0x10] sm:$0xff pattern:$0x75316420] }
  0x21   :  { %317 = vmatmul.msk.f32.vlgmr.msra.gmra.mxu3 %vm143_vm0, %v124_v8  ;;  %130 = vst [vmem:[#allocation1 + $0x10] ss:$2 sm:$0xff] %v337_v7 }
  0x22   :  { %v125_v9 = vld.sshfl [vmem:[#allocation1 + $0x20] sm:$0xff pattern:$0x75316420]  ;;  %132 = vst [vmem:[#allocation1 + $0x11] ss:$2 sm:$0xff] %v337_v7 }
  0x23   :  { %134 = vst [vmem:[#allocation1 + $0x20] ss:$2 sm:$0xff] %v337_v7 }
  0x24   :  { %v123_v10 = vld.sshfl [vmem:[#allocation1] sm:$0xff pattern:$0x75316420]  ;;  %136 = vst [vmem:[#allocation1 + $0x21] ss:$2 sm:$0xff] %v337_v7 }
  0x25   :  { %316 = vmatmul.msk.f32.vlgmr.msra.gmra.mxu0 %vm143_vm0, %v123_v10  ;;  %126 = vst [vmem:[#allocation1] ss:$2 sm:$0xff] %v337_v7 }
  0x26   :  { %128 = vst [vmem:[#allocation1 + $0x1] ss:$2 sm:$0xff] %v337_v7 }
  0x29   :  { %318 = vmatmul.msk.f32.gmra.mxu3 %vm143_vm0, %v125_v9  ;;  %v138_v14 = vld.sshfl [vmem:[#allocation1 + $0x10] sm:$0xff pattern:$0x75316420] }
  0x2b   :  { %v139_v25 = vld.sshfl [vmem:[#allocation1 + $0x20] sm:$0xff pattern:$0x75316420] }
  0x2d   :  { %v137_v13 = vld.sshfl [vmem:[#allocation1] sm:$0xff pattern:$0x75316420] }
  0xa2   :  { %v167_v15 = vpop.f32.mrf.mxu0 }
  0xa3   :  { %v168_v16 = vadd.f32 %v167_v15, %v137_v13 }
  0xa4   :  { %v170_v17 = vpop.f32.mrf.mxu3 }
  0xa5   :  { %v171_v18 = vadd.f32 %v170_v17, %v138_v14  ;;  %v179_v19 = vrot.slane %v168_v16, 4  ;;  %v185_v20 = vmax.f32 %v168_v16, 0.0 }
  0xa7   :  { %v180_v21 = vrot.slane %v171_v18, 4  ;;  %v187_v22 = vmax.f32 %v171_v18, 0.0  ;;  %v186_v23 = vmax.f32 %v179_v19, 0.0  ;;  %202 = vst [vmem:[#allocation1] ss:$2 sm:$0xff] %v185_v20 }
  0xa9   :  { %v188_v24 = vmax.f32 %v180_v21, 0.0  ;;  %206 = vst [vmem:[#allocation1 + $0x10] ss:$2 sm:$0xff] %v187_v22 }
  0xaa   :  { %204 = vst [vmem:[#allocation1 + $0x1] ss:$2 sm:$0xff] %v186_v23 }
  0xab   :  { %208 = vst [vmem:[#allocation1 + $0x11] ss:$2 sm:$0xff] %v188_v24 }
  0xac   :  { %v173_v26 = vpop.f32.mrf.mxu3 }
  0xad   :  { %v174_v27 = vadd.f32 %v173_v26, %v139_v25 }
  0xaf   :  { %v181_v28 = vrot.slane %v174_v27, 4  ;;  %v189_v29 = vmax.f32 %v174_v27, 0.0 }
  0xb1   :  { %v190_v31 = vmax.f32 %v181_v28, 0.0  ;;  %210 = vst [vmem:[#allocation1 + $0x20] ss:$2 sm:$0xff] %v189_v29  ;;  %v213_v32 = vld.sshfl [vmem:[#allocation1] sm:$0xff pattern:$0x75316420] }
  0xb2   :  { %v214_v33 = vld.sshfl [vmem:[#allocation1 + $0x10] sm:$0xff pattern:$0x75316420]  ;;  %216 = vst [vmem:[#allocation1] ss:$2 sm:$0xff] %v338_v30  ;;  %319 = vmatmul.msk.f32.vlgmr.msrb.gmra.mxu0 %vm233_vm1, %v213_v32 }
  0xb3   :  { %212 = vst [vmem:[#allocation1 + $0x21] ss:$2 sm:$0xff] %v190_v31  ;;  %320 = vmatmul.msk.f32.vlgmr.msra.gmra.mxu1 %vm233_vm1, %v214_v33 }
  0xb4   :  { %220 = vst [vmem:[#allocation1 + $0x10] ss:$2 sm:$0xff] %v338_v30 }
  0xb5   :  { %222 = vst [vmem:[#allocation1 + $0x11] ss:$2 sm:$0xff] %v338_v30 }
  0xb6   :  { %218 = vst [vmem:[#allocation1 + $0x1] ss:$2 sm:$0xff] %v338_v30 }
  0xba   :  { %v215_v34 = vld.sshfl [vmem:[#allocation1 + $0x20] sm:$0xff pattern:$0x75316420] }
  0xbb   :  { %224 = vst [vmem:[#allocation1 + $0x20] ss:$2 sm:$0xff] %v338_v30  ;;  %321 = vmatmul.msk.f32.vlgmr.msra.gmra.mxu2 %vm233_vm1, %v215_v34 }
  0xbc   :  { %226 = vst [vmem:[#allocation1 + $0x21] ss:$2 sm:$0xff] %v338_v30  ;;  %v228_v36 = vld.sshfl [vmem:[#allocation1 + $0x10] sm:$0xff pattern:$0x75316420] }
  0xbd   :  { %v227_v35 = vld.sshfl [vmem:[#allocation1] sm:$0xff pattern:$0x75316420] }
  0xc3   :  { %v229_v52 = vld.sshfl [vmem:[#allocation1 + $0x20] sm:$0xff pattern:$0x75316420] }
 0x12f   :  { %v257_v37 = vpop.f32.mrf.mxu0 }
 0x130   :  { %v260_v38 = vpop.f32.mrf.mxu1  ;;  %v258_v39 = vadd.f32 %v257_v37, %v227_v35 }
 0x131   :  { %v261_v40 = vadd.f32 %v260_v38, %v228_v36 }
 0x132   :  { %v269_v42 = vrot.slane %v258_v39, 4  ;;  %v275_v43 = vmax.f32 %v258_v39, 0.0 }
 0x133   :  { %v270_v44 = vrot.slane %v261_v40, 4  ;;  %v277_v45 = vmax.f32 %v261_v40, 0.0 }
 0x134   :  { %v276_v46 = vmax.f32 %v269_v42, 0.0  ;;  %v282_v47 = vadd.f32 %v281_v41, %v275_v43 }
 0x135   :  { %v278_v48 = vmax.f32 %v270_v44, 0.0  ;;  %v284_v49 = vadd.f32 %v281_v41, %v277_v45 }
 0x136   :  { %v283_v50 = vadd.f32 %v281_v41, %v276_v46  ;;  %289 = vst.msk [vmem:[#allocation11] sm:$0xf] %vm288_vm2, %v282_v47 }
 0x137   :  { %v285_v51 = vadd.f32 %v281_v41, %v278_v48  ;;  %291 = vst.msk [vmem:[#allocation11 + $0x8] sm:$0xf] %vm288_vm2, %v284_v49 }
 0x138   :  { %290 = vst.msk [vmem:[#allocation11 + $0x4] sm:$0xf] %vm288_vm2, %v283_v50 }
 0x139   :  { %292 = vst.msk [vmem:[#allocation11 + $0xc] sm:$0xf] %vm288_vm2, %v285_v51 }
 0x13e   :  { %v263_v53 = vpop.f32.mrf.mxu2 }
 0x13f   :  { %v264_v54 = vadd.f32 %v263_v53, %v229_v52 }
 0x141   :  { %v271_v55 = vrot.slane %v264_v54, 4  ;;  %v279_v56 = vmax.f32 %v264_v54, 0.0 }
 0x143   :  { %v280_v57 = vmax.f32 %v271_v55, 0.0  ;;  %v286_v58 = vadd.f32 %v281_v41, %v279_v56 }
 0x145   :  { %v287_v59 = vadd.f32 %v281_v41, %v280_v57  ;;  %293 = vst.msk [vmem:[#allocation11 + $0x10] sm:$0xf] %vm288_vm2, %v286_v58 }
 0x147   :  { %294 = vst.msk [vmem:[#allocation11 + $0x14] sm:$0xf] %vm288_vm2, %v287_v59 }
 0x148   :  { %307 = dma.vmem_to_hbm [thread:$0]  %s300_s23, 384, %s302_s26, [#allocation4], %s496_s15, %s496_s15, %s497_s16  }
 0x149   :  { %489 = dma.done.wait [#allocation4], 384  }
 0x14a   :  { %490 = vsyncadd [#allocation4], 4294966912 }
 0x14b   :  { %312 = vsyncpa [#allocation3], 1 }
 0x14c   :  { %313 = vsyncpa [#allocation6], 1 }
 0x14d   :  { %314 = vsyncpa [#allocation9], 1 }
 0x14e   :  { %315 = vsyncpa [#allocation4], 1 }

</bundles_post_ra>
